<compile_context>
chip_gen: v7x
topology: tpu7x:2x2x1
jax: 0.10.0
libtpu: 0.0.40
codegen_flags: <defaults>
</compile_context>

<pallas_src>
import functools

import jax
import jax.numpy as jnp
from jax.experimental import pallas as pl
from jax.experimental.pallas import tpu as pltpu

NUM_PARTIALS = 2   # leading "parallel" grid axis -> both TensorCores participate on v7x
_LANE = 128


def _round_up(x, m):
    return ((x + m - 1) // m) * m


# ----------------------------------------------------------------------------
# Fused kernel: weighted CE (tiled + accumulated) + L1 + diagonal GIoU box losses
# ----------------------------------------------------------------------------
def _set_criterion_kernel(logits_ref, tgt_ref, w_ref, sbox_ref, tbox_ref,
                          ce_num_ref, ce_den_ref, bbox_ref, giou_ref,
                          num_acc, den_acc,
                          *, tile_bq, nt, bq, inv_nb):
    c = pl.program_id(0)   # partial index ("parallel": sharded across TCs on v7x)
    i = pl.program_id(1)   # row-tile index ("arbitrary": sequential reduction)

    # ---- first tile of each partial: zero CE accumulators and do the (tiny) box math
    @pl.when(i == 0)
    def _():
        num_acc[...] = jnp.zeros_like(num_acc)
        den_acc[...] = jnp.zeros_like(den_acc)

        s = sbox_ref[...]          # [4, NPAD] f32  (cx, cy, w, h) on sublanes
        t = tbox_ref[...]

        # L1 loss: sum |s - t| over all coords / num_boxes
        l1 = jnp.sum(jnp.abs(s - t), axis=0, keepdims=True)            # [1, NPAD]
        bbox_total = jnp.sum(l1, axis=1, keepdims=True) * inv_nb       # [1, 1]

        # cxcywh -> xyxy (rows of the slab)
        scx, scy, sw, sh = s[0:1, :], s[1:2, :], s[2:3, :], s[3:4, :]
        tcx, tcy, tw, th = t[0:1, :], t[1:2, :], t[2:3, :], t[3:4, :]
        sx0, sy0 = scx - 0.5 * sw, scy - 0.5 * sh
        sx1, sy1 = scx + 0.5 * sw, scy + 0.5 * sh
        tx0, ty0 = tcx - 0.5 * tw, tcy - 0.5 * th
        tx1, ty1 = tcx + 0.5 * tw, tcy + 0.5 * th

        area_s = (sx1 - sx0) * (sy1 - sy0)
        area_t = (tx1 - tx0) * (ty1 - ty0)
        iw = jnp.maximum(jnp.minimum(sx1, tx1) - jnp.maximum(sx0, tx0), 0.0)
        ih = jnp.maximum(jnp.minimum(sy1, ty1) - jnp.maximum(sy0, ty0), 0.0)
        inter = iw * ih
        union = area_s + area_t - inter
        iou = inter / union
        ew = jnp.maximum(jnp.maximum(sx1, tx1) - jnp.minimum(sx0, tx0), 0.0)
        eh = jnp.maximum(jnp.maximum(sy1, ty1) - jnp.minimum(sy0, ty0), 0.0)
        earea = ew * eh
        giou = iou - (earea - union) / (earea + 1e-6)
        giou_total = jnp.sum(1.0 - giou, axis=1, keepdims=True) * inv_nb   # [1, 1]

        bbox_ref[...] = jnp.broadcast_to(bbox_total, bbox_ref.shape)
        giou_ref[...] = jnp.broadcast_to(giou_total, giou_ref.shape)

    # ---- weighted cross-entropy over this row tile (f32 accumulation) ----
    logits = logits_ref[...].astype(jnp.float32)      # [TILE, K]  (bf16/native in HBM)
    tgt = tgt_ref[...]                                # [TILE, 1] int32
    w = w_ref[...]                                    # [1, K] f32

    m = jnp.max(logits, axis=-1, keepdims=True)
    lse = m + jnp.log(jnp.sum(jnp.exp(logits - m), axis=-1, keepdims=True))

    # select + reduce gather of target logit / target weight (no one-hot multiplies)
    col = jax.lax.broadcasted_iota(jnp.int32, logits.shape, 1)
    hit = col == tgt
    logit_y = jnp.max(jnp.where(hit, logits, -jnp.inf), axis=-1, keepdims=True)
    w_y = jnp.max(jnp.where(hit, w, 0.0), axis=-1, keepdims=True)

    # mask rows that are padding (global row >= bq)
    row0 = (c * nt + i) * tile_bq
    row = row0 + jax.lax.broadcasted_iota(jnp.int32, (tile_bq, 1), 0)
    w_eff = jnp.where(row < bq, w_y, 0.0)

    nll = lse - logit_y
    num_acc[...] += jnp.sum(w_eff * nll, axis=0, keepdims=True)
    den_acc[...] += jnp.sum(w_eff, axis=0, keepdims=True)

    # ---- last tile of this partial: publish partial CE numerator / denominator ----
    @pl.when(i == nt - 1)
    def _():
        ce_num_ref[...] = jnp.broadcast_to(num_acc[...], ce_num_ref.shape)
        ce_den_ref[...] = jnp.broadcast_to(den_acc[...], ce_den_ref.shape)


# ----------------------------------------------------------------------------
# Wrapper: identity matching (static slices), padding, pallas_call, combine
# ----------------------------------------------------------------------------
def set_criterion_forward(pred_logits, pred_boxes, tgt_labels, tgt_boxes,
                          empty_weight, num_classes, *, tile_bq_max=512):
    """Equivalent of SetCriterion.forward with losses = ['labels', 'boxes']."""
    B, Q, K = pred_logits.shape
    _, T = tgt_labels.shape
    if T > Q:
        raise ValueError("num targets per image must be <= num queries")
    BQ = B * Q
    N = B * T

    # TODO(synk): num_boxes assumes all B*T targets are real and is not all-reduced
    # across data-parallel replicas (torch.distributed in the reference).
    inv_num_boxes = 1.0 / max(float(N), 1.0)

    # ---- classification targets via static concat (identity matching, no scatter) ----
    pad_cls = jnp.full((B, Q - T), num_classes, dtype=jnp.int32)
    target_classes = jnp.concatenate([tgt_labels.astype(jnp.int32), pad_cls], axis=1)

    logits2d = pred_logits.reshape(BQ, K)          # native dtype (bf16 ok); cast in-kernel
    targets2d = target_classes.reshape(BQ, 1)

    tile_bq = min(tile_bq_max, _round_up(max(-(-BQ // NUM_PARTIALS), 8), 8))
    nt = -(-BQ // (NUM_PARTIALS * tile_bq))
    bq_pad = NUM_PARTIALS * nt * tile_bq
    if bq_pad > BQ:
        logits2d = jnp.pad(logits2d, ((0, bq_pad - BQ), (0, 0)))
        targets2d = jnp.pad(targets2d, ((0, bq_pad - BQ), (0, 0)))

    weight2d = empty_weight.reshape(1, K).astype(jnp.float32)

    # ---- matched boxes via static slices, transposed to [4, NPAD] lane-dense slabs ----
    src_boxes = pred_boxes[:, :T, :].reshape(N, 4).astype(jnp.float32)
    target_boxes = tgt_boxes[..., :4].reshape(N, 4).astype(jnp.float32)
    npad = _round_up(max(N, _LANE), _LANE)
    neutral = jnp.array([[0.5], [0.5], [1.0], [1.0]], dtype=jnp.float32)  # zero-loss pad box

    def to_slab(b):
        slab = b.T                                  # [4, N]
        if npad > N:
            slab = jnp.concatenate(
                [slab, jnp.broadcast_to(neutral, (4, npad - N))], axis=1)
        return slab

    src_slab = to_slab(src_boxes)
    tgt_slab = to_slab(target_boxes)

    kernel = functools.partial(_set_criterion_kernel, tile_bq=tile_bq, nt=nt,
                               bq=BQ, inv_nb=inv_num_boxes)

    out_part = jax.ShapeDtypeStruct((1, NUM_PARTIALS * _LANE), jnp.float32)
    ce_num, ce_den, bbox, giou = pl.pallas_call(
        kernel,
        out_shape=(out_part, out_part, out_part, out_part),
        grid_spec=pltpu.PrefetchScalarGridSpec(
            num_scalar_prefetch=0,
            grid=(NUM_PARTIALS, nt),
            in_specs=[
                pl.BlockSpec((tile_bq, K), lambda c, i: (c * nt + i, 0)),
                pl.BlockSpec((tile_bq, 1), lambda c, i: (c * nt + i, 0)),
                pl.BlockSpec((1, K), lambda c, i: (0, 0)),
                pl.BlockSpec((4, npad), lambda c, i: (0, 0)),
                pl.BlockSpec((4, npad), lambda c, i: (0, 0)),
            ],
            out_specs=(
                pl.BlockSpec((1, _LANE), lambda c, i: (0, c)),
                pl.BlockSpec((1, _LANE), lambda c, i: (0, c)),
                pl.BlockSpec((1, _LANE), lambda c, i: (0, c)),
                pl.BlockSpec((1, _LANE), lambda c, i: (0, c)),
            ),
            scratch_shapes=[pltpu.VMEM((1, 1), jnp.float32),
                            pltpu.VMEM((1, 1), jnp.float32)],
        ),
        compiler_params=pltpu.CompilerParams(
            dimension_semantics=("parallel", "arbitrary")),
    )(logits2d, targets2d, weight2d, src_slab, tgt_slab)

    num = ce_num.reshape(NUM_PARTIALS, _LANE)[:, 0].sum()
    den = ce_den.reshape(NUM_PARTIALS, _LANE)[:, 0].sum()
    return {
        'loss_ce': num / den,
        'loss_bbox': bbox[0, 0],
        'loss_giou': giou[0, 0],
    }


# ----------------------------------------------------------------------------
# Pure-JAX reference (same identity matching / num_boxes convention) for checking
# ----------------------------------------------------------------------------
def _ref_losses(pred_logits, pred_boxes, tgt_labels, tgt_boxes, empty_weight, num_classes):
    B, Q, K = pred_logits.shape
    T = tgt_labels.shape[1]
    logits = pred_logits.astype(jnp.float32).reshape(B * Q, K)
    tc = jnp.concatenate(
        [tgt_labels.astype(jnp.int32),
         jnp.full((B, Q - T), num_classes, dtype=jnp.int32)], axis=1).reshape(-1)
    lse = jax.scipy.special.logsumexp(logits, axis=-1)
    ly = jnp.take_along_axis(logits, tc[:, None], axis=-1)[:, 0]
    wy = empty_weight.astype(jnp.float32)[tc]
    loss_ce = jnp.sum(wy * (lse - ly)) / jnp.sum(wy)

    nb = max(float(B * T), 1.0)
    src = pred_boxes[:, :T, :].reshape(-1, 4).astype(jnp.float32)
    tgt = tgt_boxes[..., :4].reshape(-1, 4).astype(jnp.float32)
    loss_bbox = jnp.sum(jnp.abs(src - tgt)) / nb

    def xyxy(b):
        cx, cy, w, h = b[:, 0], b[:, 1], b[:, 2], b[:, 3]
        return cx - 0.5 * w, cy - 0.5 * h, cx + 0.5 * w, cy + 0.5 * h

    sx0, sy0, sx1, sy1 = xyxy(src)
    tx0, ty0, tx1, ty1 = xyxy(tgt)
    area_s = (sx1 - sx0) * (sy1 - sy0)
    area_t = (tx1 - tx0) * (ty1 - ty0)
    iw = jnp.maximum(jnp.minimum(sx1, tx1) - jnp.maximum(sx0, tx0), 0.0)
    ih = jnp.maximum(jnp.minimum(sy1, ty1) - jnp.maximum(sy0, ty0), 0.0)
    inter = iw * ih
    union = area_s + area_t - inter
    iou = inter / union
    ew = jnp.maximum(sx1, tx1) - jnp.minimum(sx0, tx0)
    eh = jnp.maximum(sy1, ty1) - jnp.minimum(sy0, ty0)
    earea = ew * eh
    giou = iou - (earea - union) / (earea + 1e-6)
    loss_giou = jnp.sum(1.0 - giou) / nb
    return {'loss_ce': loss_ce, 'loss_bbox': loss_bbox, 'loss_giou': loss_giou}


if __name__ == "__main__":
    key = jax.random.PRNGKey(0)
    B, Q, T = 2, 8, 3              # batch, num queries, targets per image
    num_classes = 4
    K = num_classes + 1

    k1, k2, k3, k4 = jax.random.split(key, 4)
    # logits in bf16 (native model dtype); kernel upcasts per tile
    pred_logits = jax.random.normal(k1, (B, Q, K), dtype=jnp.float32).astype(jnp.bfloat16)
    pred_boxes = jax.nn.sigmoid(jax.random.normal(k2, (B, Q, 4), dtype=jnp.float32))
    tgt_labels = jax.random.randint(k3, (B, T), 0, num_classes, dtype=jnp.int32)
    tgt_boxes = jax.nn.sigmoid(jax.random.normal(k4, (B, T, 4), dtype=jnp.float32))

    # empty_weight buffer (coef): weight 1.0 per real class, 0.1 for no-object class
    empty_weight = jnp.array([1.0] * num_classes + [0.1], dtype=jnp.float32)

    losses = set_criterion_forward(pred_logits, pred_boxes, tgt_labels, tgt_boxes,
                                   empty_weight, num_classes)
    jax.block_until_ready(losses)

    ref = _ref_losses(pred_logits, pred_boxes, tgt_labels, tgt_boxes,
                      empty_weight, num_classes)
    for name in ('loss_ce', 'loss_bbox', 'loss_giou'):
        assert bool(jnp.allclose(losses[name], ref[name], rtol=1e-3, atol=1e-5)), (
            name, float(losses[name]), float(ref[name]))

    print("KERNEL_OK")
</pallas_src>

<mosaic_0001>
module attributes {stable_mosaic.version = 11 : i64} {
  func.func @_set_criterion_kernel(%arg0: i32, %arg1: i32, %arg2: memref<8x5xbf16, #tpu.memory_space<vmem>>, %arg3: memref<8x1xi32, #tpu.memory_space<vmem>>, %arg4: memref<1x5xf32, #tpu.memory_space<vmem>>, %arg5: memref<4x128xf32, #tpu.memory_space<vmem>>, %arg6: memref<4x128xf32, #tpu.memory_space<vmem>>, %arg7: memref<1x128xf32, #tpu.memory_space<vmem>>, %arg8: memref<1x128xf32, #tpu.memory_space<vmem>>, %arg9: memref<1x128xf32, #tpu.memory_space<vmem>>, %arg10: memref<1x128xf32, #tpu.memory_space<vmem>>, %arg11: memref<1x1xf32, #tpu.memory_space<vmem>>, %arg12: memref<1x1xf32, #tpu.memory_space<vmem>>) attributes {dimension_semantics = [#tpu.dimension_semantics<parallel>, #tpu.dimension_semantics<arbitrary>], iteration_bounds = array<i64: 2, 1>, scalar_prefetch = 0 : i64, scratch_operands = 2 : i64, tpu.core_type = #tpu.core_type<tc>, window_params = [{transform_indices = @transform_0, window_bounds = array<i64: 8, 5>}, {transform_indices = @transform_1, window_bounds = array<i64: 8, 1>}, {pipeline_mode = #tpu.pipeline_mode<synchronous>, transform_indices = @transform_2, window_bounds = array<i64: 1, 5>}, {pipeline_mode = #tpu.pipeline_mode<synchronous>, transform_indices = @transform_3, window_bounds = array<i64: 4, 128>}, {pipeline_mode = #tpu.pipeline_mode<synchronous>, transform_indices = @transform_4, window_bounds = array<i64: 4, 128>}, {transform_indices = @transform_5, window_bounds = array<i64: 1, 128>}, {transform_indices = @transform_6, window_bounds = array<i64: 1, 128>}, {transform_indices = @transform_7, window_bounds = array<i64: 1, 128>}, {transform_indices = @transform_8, window_bounds = array<i64: 1, 128>}]} {
    %c0_i32 = arith.constant 0 : i32
    %0 = arith.cmpi eq, %arg1, %c0_i32 : i32
    %1 = arith.extui %0 : i1 to i32
    %c0_i32_0 = arith.constant 0 : i32
    %2 = arith.cmpi ne, %1, %c0_i32_0 : i32
    scf.if %2 {
      %cst_24 = arith.constant 0.000000e+00 : f32
      %54 = vector.broadcast %cst_24 : f32 to vector<1x1xf32>
      %c0_25 = arith.constant 0 : index
      %c0_26 = arith.constant 0 : index
      %55 = vector.load %arg11[%c0_25, %c0_26] : memref<1x1xf32, #tpu.memory_space<vmem>>, vector<1x1xf32>
      tpu.vector_store %arg11[%c0_25, %c0_26], %54 {strides = array<i32>} : memref<1x1xf32, #tpu.memory_space<vmem>>, vector<1x1xf32>,
      %cst_27 = arith.constant 0.000000e+00 : f32
      %56 = vector.broadcast %cst_27 : f32 to vector<1x1xf32>
      %c0_28 = arith.constant 0 : index
      %c0_29 = arith.constant 0 : index
      %57 = vector.load %arg12[%c0_28, %c0_29] : memref<1x1xf32, #tpu.memory_space<vmem>>, vector<1x1xf32>
      tpu.vector_store %arg12[%c0_28, %c0_29], %56 {strides = array<i32>} : memref<1x1xf32, #tpu.memory_space<vmem>>, vector<1x1xf32>,
      %c0_30 = arith.constant 0 : index
      %c0_31 = arith.constant 0 : index
      %58 = vector.load %arg5[%c0_30, %c0_31] : memref<4x128xf32, #tpu.memory_space<vmem>>, vector<4x128xf32>
      %c0_32 = arith.constant 0 : index
      %c0_33 = arith.constant 0 : index
      %59 = vector.load %arg6[%c0_32, %c0_33] : memref<4x128xf32, #tpu.memory_space<vmem>>, vector<4x128xf32>
      %60 = arith.subf %58, %59 : vector<4x128xf32>
      %61 = math.absf %60 : vector<4x128xf32>
      %cst_34 = arith.constant dense<0.000000e+00> : vector<128xf32>
      %62 = vector.multi_reduction <add>, %61, %cst_34 [0] : vector<4x128xf32> to vector<128xf32>
      %63 = vector.shape_cast %62 : vector<128xf32> to vector<1x128xf32>
      %cst_35 = arith.constant dense<0.000000e+00> : vector<1xf32>
      %64 = vector.multi_reduction <add>, %63, %cst_35 [1] : vector<1x128xf32> to vector<1xf32>
      %65 = vector.shape_cast %64 : vector<1xf32> to vector<1x1xf32>
      %cst_36 = arith.constant 0.166666672 : f32
      %66 = vector.broadcast %cst_36 : f32 to vector<1x1xf32>
      %67 = arith.mulf %65, %66 : vector<1x1xf32>
      %68 = vector.extract_strided_slice %58 {offsets = [0, 0], sizes = [1, 128], strides = [1, 1]} : vector<4x128xf32> to vector<1x128xf32>
      %69 = vector.extract_strided_slice %58 {offsets = [1, 0], sizes = [1, 128], strides = [1, 1]} : vector<4x128xf32> to vector<1x128xf32>
      %70 = vector.extract_strided_slice %58 {offsets = [2, 0], sizes = [1, 128], strides = [1, 1]} : vector<4x128xf32> to vector<1x128xf32>
      %71 = vector.extract_strided_slice %58 {offsets = [3, 0], sizes = [1, 128], strides = [1, 1]} : vector<4x128xf32> to vector<1x128xf32>
      %72 = vector.extract_strided_slice %59 {offsets = [0, 0], sizes = [1, 128], strides = [1, 1]} : vector<4x128xf32> to vector<1x128xf32>
      %73 = vector.extract_strided_slice %59 {offsets = [1, 0], sizes = [1, 128], strides = [1, 1]} : vector<4x128xf32> to vector<1x128xf32>
      %74 = vector.extract_strided_slice %59 {offsets = [2, 0], sizes = [1, 128], strides = [1, 1]} : vector<4x128xf32> to vector<1x128xf32>
      %75 = vector.extract_strided_slice %59 {offsets = [3, 0], sizes = [1, 128], strides = [1, 1]} : vector<4x128xf32> to vector<1x128xf32>
      %cst_37 = arith.constant 5.000000e-01 : f32
      %76 = vector.broadcast %cst_37 : f32 to vector<1x128xf32>
      %77 = arith.mulf %76, %70 : vector<1x128xf32>
      %78 = arith.subf %68, %77 : vector<1x128xf32>
      %cst_38 = arith.constant 5.000000e-01 : f32
      %79 = vector.broadcast %cst_38 : f32 to vector<1x128xf32>
      %80 = arith.mulf %79, %71 : vector<1x128xf32>
      %81 = arith.subf %69, %80 : vector<1x128xf32>
      %cst_39 = arith.constant 5.000000e-01 : f32
      %82 = vector.broadcast %cst_39 : f32 to vector<1x128xf32>
      %83 = arith.mulf %82, %70 : vector<1x128xf32>
      %84 = arith.addf %68, %83 : vector<1x128xf32>
      %cst_40 = arith.constant 5.000000e-01 : f32
      %85 = vector.broadcast %cst_40 : f32 to vector<1x128xf32>
      %86 = arith.mulf %85, %71 : vector<1x128xf32>
      %87 = arith.addf %69, %86 : vector<1x128xf32>
      %cst_41 = arith.constant 5.000000e-01 : f32
      %88 = vector.broadcast %cst_41 : f32 to vector<1x128xf32>
      %89 = arith.mulf %88, %74 : vector<1x128xf32>
      %90 = arith.subf %72, %89 : vector<1x128xf32>
      %cst_42 = arith.constant 5.000000e-01 : f32
      %91 = vector.broadcast %cst_42 : f32 to vector<1x128xf32>
      %92 = arith.mulf %91, %75 : vector<1x128xf32>
      %93 = arith.subf %73, %92 : vector<1x128xf32>
      %cst_43 = arith.constant 5.000000e-01 : f32
      %94 = vector.broadcast %cst_43 : f32 to vector<1x128xf32>
      %95 = arith.mulf %94, %74 : vector<1x128xf32>
      %96 = arith.addf %72, %95 : vector<1x128xf32>
      %cst_44 = arith.constant 5.000000e-01 : f32
      %97 = vector.broadcast %cst_44 : f32 to vector<1x128xf32>
      %98 = arith.mulf %97, %75 : vector<1x128xf32>
      %99 = arith.addf %73, %98 : vector<1x128xf32>
      %100 = arith.subf %84, %78 : vector<1x128xf32>
      %101 = arith.subf %87, %81 : vector<1x128xf32>
      %102 = arith.mulf %100, %101 : vector<1x128xf32>
      %103 = arith.subf %96, %90 : vector<1x128xf32>
      %104 = arith.subf %99, %93 : vector<1x128xf32>
      %105 = arith.mulf %103, %104 : vector<1x128xf32>
      %106 = arith.minimumf %84, %96 : vector<1x128xf32>
      %107 = arith.maximumf %78, %90 : vector<1x128xf32>
      %108 = arith.subf %106, %107 : vector<1x128xf32>
      %cst_45 = arith.constant 0.000000e+00 : f32
      %109 = vector.broadcast %cst_45 : f32 to vector<1x128xf32>
      %110 = arith.maximumf %108, %109 : vector<1x128xf32>
      %111 = arith.minimumf %87, %99 : vector<1x128xf32>
      %112 = arith.maximumf %81, %93 : vector<1x128xf32>
      %113 = arith.subf %111, %112 : vector<1x128xf32>
      %cst_46 = arith.constant 0.000000e+00 : f32
      %114 = vector.broadcast %cst_46 : f32 to vector<1x128xf32>
      %115 = arith.maximumf %113, %114 : vector<1x128xf32>
      %116 = arith.mulf %110, %115 : vector<1x128xf32>
      %117 = arith.addf %102, %105 : vector<1x128xf32>
      %118 = arith.subf %117, %116 : vector<1x128xf32>
      %119 = arith.divf %116, %118 : vector<1x128xf32>
      %120 = arith.maximumf %84, %96 : vector<1x128xf32>
      %121 = arith.minimumf %78, %90 : vector<1x128xf32>
      %122 = arith.subf %120, %121 : vector<1x128xf32>
      %cst_47 = arith.constant 0.000000e+00 : f32
      %123 = vector.broadcast %cst_47 : f32 to vector<1x128xf32>
      %124 = arith.maximumf %122, %123 : vector<1x128xf32>
      %125 = arith.maximumf %87, %99 : vector<1x128xf32>
      %126 = arith.minimumf %81, %93 : vector<1x128xf32>
      %127 = arith.subf %125, %126 : vector<1x128xf32>
      %cst_48 = arith.constant 0.000000e+00 : f32
      %128 = vector.broadcast %cst_48 : f32 to vector<1x128xf32>
      %129 = arith.maximumf %127, %128 : vector<1x128xf32>
      %130 = arith.mulf %124, %129 : vector<1x128xf32>
      %131 = arith.subf %130, %118 : vector<1x128xf32>
      %cst_49 = arith.constant 9.99999997E-7 : f32
      %132 = vector.broadcast %cst_49 : f32 to vector<1x128xf32>
      %133 = arith.addf %130, %132 : vector<1x128xf32>
      %134 = arith.divf %131, %133 : vector<1x128xf32>
      %135 = arith.subf %119, %134 : vector<1x128xf32>
      %cst_50 = arith.constant 1.000000e+00 : f32
      %136 = vector.broadcast %cst_50 : f32 to vector<1x128xf32>
      %137 = arith.subf %136, %135 : vector<1x128xf32>
      %cst_51 = arith.constant dense<0.000000e+00> : vector<1xf32>
      %138 = vector.multi_reduction <add>, %137, %cst_51 [1] : vector<1x128xf32> to vector<1xf32>
      %139 = vector.shape_cast %138 : vector<1xf32> to vector<1x1xf32>
      %cst_52 = arith.constant 0.166666672 : f32
      %140 = vector.broadcast %cst_52 : f32 to vector<1x1xf32>
      %141 = arith.mulf %139, %140 : vector<1x1xf32>
      %142 = vector.shape_cast %67 : vector<1x1xf32> to vector<1x1xf32>
      %143 = vector.broadcast %142 : vector<1x1xf32> to vector<1x128xf32>
      %c0_53 = arith.constant 0 : index
      %c0_54 = arith.constant 0 : index
      %144 = vector.load %arg9[%c0_53, %c0_54] : memref<1x128xf32, #tpu.memory_space<vmem>>, vector<1x128xf32>
      tpu.vector_store %arg9[%c0_53, %c0_54], %143 {strides = array<i32>} : memref<1x128xf32, #tpu.memory_space<vmem>>, vector<1x128xf32>,
      %145 = vector.shape_cast %141 : vector<1x1xf32> to vector<1x1xf32>
      %146 = vector.broadcast %145 : vector<1x1xf32> to vector<1x128xf32>
      %c0_55 = arith.constant 0 : index
      %c0_56 = arith.constant 0 : index
      %147 = vector.load %arg10[%c0_55, %c0_56] : memref<1x128xf32, #tpu.memory_space<vmem>>, vector<1x128xf32>
      tpu.vector_store %arg10[%c0_55, %c0_56], %146 {strides = array<i32>} : memref<1x128xf32, #tpu.memory_space<vmem>>, vector<1x128xf32>,
    } else {
    }
    %c0 = arith.constant 0 : index
    %c0_1 = arith.constant 0 : index
    %3 = vector.load %arg2[%c0, %c0_1] : memref<8x5xbf16, #tpu.memory_space<vmem>>, vector<8x5xbf16>
    %4 = arith.extf %3 : vector<8x5xbf16> to vector<8x5xf32>
    %c0_2 = arith.constant 0 : index
    %c0_3 = arith.constant 0 : index
    %5 = vector.load %arg3[%c0_2, %c0_3] : memref<8x1xi32, #tpu.memory_space<vmem>>, vector<8x1xi32>
    %c0_4 = arith.constant 0 : index
    %c0_5 = arith.constant 0 : index
    %6 = vector.load %arg4[%c0_4, %c0_5] : memref<1x5xf32, #tpu.memory_space<vmem>>, vector<1x5xf32>
    %cst = arith.constant dense<0xFF800000> : vector<8xf32>
    %7 = vector.multi_reduction <maximumf>, %4, %cst [1] : vector<8x5xf32> to vector<8xf32>
    %8 = vector.shape_cast %7 : vector<8xf32> to vector<8x1xf32>
    %9 = vector.broadcast %8 : vector<8x1xf32> to vector<8x5xf32>
    %10 = arith.subf %4, %9 : vector<8x5xf32>
    %11 = math.exp %10 : vector<8x5xf32>
    %cst_6 = arith.constant dense<0.000000e+00> : vector<8xf32>
    %12 = vector.multi_reduction <add>, %11, %cst_6 [1] : vector<8x5xf32> to vector<8xf32>
    %13 = vector.shape_cast %12 : vector<8xf32> to vector<8x1xf32>
    %14 = math.log %13 : vector<8x1xf32>
    %15 = arith.addf %8, %14 : vector<8x1xf32>
    %16 = tpu.iota {dimensions = array<i32: 1>} : vector<8x5xi32>
    %17 = vector.broadcast %5 : vector<8x1xi32> to vector<8x5xi32>
    %18 = arith.cmpi eq, %16, %17 : vector<8x5xi32>
    %cst_7 = arith.constant 0xFF800000 : f32
    %19 = vector.broadcast %cst_7 : f32 to vector<8x5xf32>
    %20 = arith.select %18, %4, %19 : vector<8x5xi1>, vector<8x5xf32>
    %cst_8 = arith.constant dense<0xFF800000> : vector<8xf32>
    %21 = vector.multi_reduction <maximumf>, %20, %cst_8 [1] : vector<8x5xf32> to vector<8xf32>
    %22 = vector.shape_cast %21 : vector<8xf32> to vector<8x1xf32>
    %cst_9 = arith.constant 0.000000e+00 : f32
    %23 = vector.shape_cast %6 : vector<1x5xf32> to vector<1x5xf32>
    %24 = vector.broadcast %23 : vector<1x5xf32> to vector<8x5xf32>
    %25 = vector.broadcast %cst_9 : f32 to vector<8x5xf32>
    %26 = arith.select %18, %24, %25 : vector<8x5xi1>, vector<8x5xf32>
    %cst_10 = arith.constant dense<0xFF800000> : vector<8xf32>
    %27 = vector.multi_reduction <maximumf>, %26, %cst_10 [1] : vector<8x5xf32> to vector<8xf32>
    %28 = vector.shape_cast %27 : vector<8xf32> to vector<8x1xf32>
    %c1_i32 = arith.constant 1 : i32
    %29 = arith.muli %arg0, %c1_i32 : i32
    %30 = arith.addi %29, %arg1 : i32
    %c8_i32 = arith.constant 8 : i32
    %31 = arith.muli %30, %c8_i32 : i32
    %32 = tpu.iota {dimensions = array<i32: 0>} : vector<8x1xi32>
    %33 = vector.broadcast %31 : i32 to vector<8x1xi32>
    %34 = arith.addi %33, %32 : vector<8x1xi32>
    %c16_i32 = arith.constant 16 : i32
    %35 = vector.broadcast %c16_i32 : i32 to vector<8x1xi32>
    %36 = arith.cmpi slt, %34, %35 : vector<8x1xi32>
    %cst_11 = arith.constant 0.000000e+00 : f32
    %37 = vector.broadcast %cst_11 : f32 to vector<8x1xf32>
    %38 = arith.select %36, %28, %37 : vector<8x1xi1>, vector<8x1xf32>
    %39 = arith.subf %15, %22 : vector<8x1xf32>
    %c0_12 = arith.constant 0 : index
    %c0_13 = arith.constant 0 : index
    %40 = vector.load %arg11[%c0_12, %c0_13] : memref<1x1xf32, #tpu.memory_space<vmem>>, vector<1x1xf32>
    %41 = arith.mulf %38, %39 : vector<8x1xf32>
    %cst_14 = arith.constant dense<0.000000e+00> : vector<1xf32>
    %42 = vector.multi_reduction <add>, %41, %cst_14 [0] : vector<8x1xf32> to vector<1xf32>
    %43 = vector.shape_cast %42 : vector<1xf32> to vector<1x1xf32>
    %44 = arith.addf %40, %43 : vector<1x1xf32>
    %c0_15 = arith.constant 0 : index
    %c0_16 = arith.constant 0 : index
    %45 = vector.load %arg11[%c0_15, %c0_16] : memref<1x1xf32, #tpu.memory_space<vmem>>, vector<1x1xf32>
    tpu.vector_store %arg11[%c0_15, %c0_16], %44 {strides = array<i32>} : memref<1x1xf32, #tpu.memory_space<vmem>>, vector<1x1xf32>,
    %c0_17 = arith.constant 0 : index
    %c0_18 = arith.constant 0 : index
    %46 = vector.load %arg12[%c0_17, %c0_18] : memref<1x1xf32, #tpu.memory_space<vmem>>, vector<1x1xf32>
    %cst_19 = arith.constant dense<0.000000e+00> : vector<1xf32>
    %47 = vector.multi_reduction <add>, %38, %cst_19 [0] : vector<8x1xf32> to vector<1xf32>
    %48 = vector.shape_cast %47 : vector<1xf32> to vector<1x1xf32>
    %49 = arith.addf %46, %48 : vector<1x1xf32>
    %c0_20 = arith.constant 0 : index
    %c0_21 = arith.constant 0 : index
    %50 = vector.load %arg12[%c0_20, %c0_21] : memref<1x1xf32, #tpu.memory_space<vmem>>, vector<1x1xf32>
    tpu.vector_store %arg12[%c0_20, %c0_21], %49 {strides = array<i32>} : memref<1x1xf32, #tpu.memory_space<vmem>>, vector<1x1xf32>,
    %c0_i32_22 = arith.constant 0 : i32
    %51 = arith.cmpi eq, %arg1, %c0_i32_22 : i32
    %52 = arith.extui %51 : i1 to i32
    %c0_i32_23 = arith.constant 0 : i32
    %53 = arith.cmpi ne, %52, %c0_i32_23 : i32
    scf.if %53 {
      %c0_24 = arith.constant 0 : index
      %c0_25 = arith.constant 0 : index
      %54 = vector.load %arg11[%c0_24, %c0_25] : memref<1x1xf32, #tpu.memory_space<vmem>>, vector<1x1xf32>
      %55 = vector.shape_cast %54 : vector<1x1xf32> to vector<1x1xf32>
      %56 = vector.broadcast %55 : vector<1x1xf32> to vector<1x128xf32>
      %c0_26 = arith.constant 0 : index
      %c0_27 = arith.constant 0 : index
      %57 = vector.load %arg7[%c0_26, %c0_27] : memref<1x128xf32, #tpu.memory_space<vmem>>, vector<1x128xf32>
      tpu.vector_store %arg7[%c0_26, %c0_27], %56 {strides = array<i32>} : memref<1x128xf32, #tpu.memory_space<vmem>>, vector<1x128xf32>,
      %c0_28 = arith.constant 0 : index
      %c0_29 = arith.constant 0 : index
      %58 = vector.load %arg12[%c0_28, %c0_29] : memref<1x1xf32, #tpu.memory_space<vmem>>, vector<1x1xf32>
      %59 = vector.shape_cast %58 : vector<1x1xf32> to vector<1x1xf32>
      %60 = vector.broadcast %59 : vector<1x1xf32> to vector<1x128xf32>
      %c0_30 = arith.constant 0 : index
      %c0_31 = arith.constant 0 : index
      %61 = vector.load %arg8[%c0_30, %c0_31] : memref<1x128xf32, #tpu.memory_space<vmem>>, vector<1x128xf32>
      tpu.vector_store %arg8[%c0_30, %c0_31], %60 {strides = array<i32>} : memref<1x128xf32, #tpu.memory_space<vmem>>, vector<1x128xf32>,
    } else {
    }
    return
  }
  func.func @transform_0(%arg0: i32, %arg1: i32) -> (i32, i32) {
    %c1_i32 = arith.constant 1 : i32
    %0 = arith.muli %arg0, %c1_i32 : i32
    %1 = arith.addi %0, %arg1 : i32
    %c0_i32 = arith.constant 0 : i32
    %c0_i32_0 = arith.constant 0 : i32
    return %1, %c0_i32 : i32, i32
  }
  func.func @transform_1(%arg0: i32, %arg1: i32) -> (i32, i32) {
    %c1_i32 = arith.constant 1 : i32
    %0 = arith.muli %arg0, %c1_i32 : i32
    %1 = arith.addi %0, %arg1 : i32
    %c0_i32 = arith.constant 0 : i32
    %c0_i32_0 = arith.constant 0 : i32
    return %1, %c0_i32 : i32, i32
  }
  func.func @transform_2(%arg0: i32, %arg1: i32) -> (i32, i32) {
    %c0_i32 = arith.constant 0 : i32
    %c0_i32_0 = arith.constant 0 : i32
    %c0_i32_1 = arith.constant 0 : i32
    return %c0_i32, %c0_i32_0 : i32, i32
  }
  func.func @transform_3(%arg0: i32, %arg1: i32) -> (i32, i32) {
    %c0_i32 = arith.constant 0 : i32
    %c0_i32_0 = arith.constant 0 : i32
    %c0_i32_1 = arith.constant 0 : i32
    return %c0_i32, %c0_i32_0 : i32, i32
  }
  func.func @transform_4(%arg0: i32, %arg1: i32) -> (i32, i32) {
    %c0_i32 = arith.constant 0 : i32
    %c0_i32_0 = arith.constant 0 : i32
    %c0_i32_1 = arith.constant 0 : i32
    return %c0_i32, %c0_i32_0 : i32, i32
  }
  func.func @transform_5(%arg0: i32, %arg1: i32) -> (i32, i32) {
    %c0_i32 = arith.constant 0 : i32
    %c0_i32_0 = arith.constant 0 : i32
    return %c0_i32, %arg0 : i32, i32
  }
  func.func @transform_6(%arg0: i32, %arg1: i32) -> (i32, i32) {
    %c0_i32 = arith.constant 0 : i32
    %c0_i32_0 = arith.constant 0 : i32
    return %c0_i32, %arg0 : i32, i32
  }
  func.func @transform_7(%arg0: i32, %arg1: i32) -> (i32, i32) {
    %c0_i32 = arith.constant 0 : i32
    %c0_i32_0 = arith.constant 0 : i32
    return %c0_i32, %arg0 : i32, i32
  }
  func.func @transform_8(%arg0: i32, %arg1: i32) -> (i32, i32) {
    %c0_i32 = arith.constant 0 : i32
    %c0_i32_0 = arith.constant 0 : i32
    return %c0_i32, %arg0 : i32, i32
  }
}

</mosaic_0001>

<bundles_post_ra>
// kernel: tpu_custom_call.1
= control target key start
LH: loop header
LB: loop body
LE: loop exit
PB: predicated region body
PF: predicated region fallthrough
CT: control target
= control target key end

     0   :  { %s1336_s0 = inlined_call_operand.vmem [shape: bf16[16,5], index: 0, kind: input, shape index: {}]   ;;  %s1337_s1 = inlined_call_operand.vmem [shape: s32[16,1], index: 1, kind: input, shape index: {}]   ;;  %s1338_s2 = inlined_call_operand.vmem [shape: f32[1,5], index: 2, kind: input, shape index: {}]   ;;  %s1339_s3 = inlined_call_operand.vmem [shape: f32[4,128], index: 3, kind: input, shape index: {}]   ;;  %s1340_s4 = inlined_call_operand.vmem [shape: f32[4,128], index: 4, kind: input, shape index: {}]   ;;  %s1341_s5 = inlined_call_operand.hbm [shape: f32[1,256], index: 5, kind: output, shape index: {0}]   ;;  %s1342_s6 = inlined_call_operand.hbm [shape: f32[1,256], index: 6, kind: output, shape index: {1}]   ;;  %s1343_s7 = inlined_call_operand.hbm [shape: f32[1,256], index: 7, kind: output, shape index: {2}]   ;;  %s1344_s8 = inlined_call_operand.hbm [shape: f32[1,256], index: 8, kind: output, shape index: {3}]  }
   0x1   :  { %1348 = sst [smem:[#allocation14_spill]] %s1336_s0 }
   0x2   :  { %1349 = sst [smem:[#allocation15_spill]] %s1337_s1 }
   0x3   :  { %14 = vsyncpa [#allocation5], 0 }
   0x4   :  { %16 = vsyncpa [#allocation5 + $0x1], 0 }
   0x5   :  { %17 = vsyncpa [#allocation7], 0 }
   0x6   :  { %19 = vsyncpa [#allocation7 + $0x1], 0 }
   0x7   :  { %20 = vsyncpa [#allocation10], 0 }
   0x8   :  { %22 = vsyncpa [#allocation10 + $0x1], 0  ;;  %s1076_s27 = smov 0   ;;  %s1078_s28 = smov 0  }
   0x9   :  { %s1080_s29 = smov 0   ;;  %s1082_s30 = smov 0  }
   0xa   :  { %s1084_s9 = smov 0   ;;  %s1086_s10 = smov 0  }
   0xb LB: > { %s1347_s11 = sadd.s32 4294967295, %s1023_s10   ;;  %s1345_s12 = sadd.s32 4294967294, %s1023_s10   ;;  %s1023_s10 = sphi %s1086_s10, %s28_s10   ;;  %s1019_s9 = sphi %s1084_s9, %s1363_s9   ;;  %s1015_s30 = sphi %s1082_s30, %s1362_s30   ;;  %s1011_s29 = sphi %s1080_s29, %s1361_s29   ;;  %s1007_s28 = sphi %s1078_s28, %s1360_s28   ;;  %s1003_s27 = sphi %s1076_s27, %s1359_s27  }
   0xc   : > { %s40_s13 = sadd.s32 1, %s1019_s9  ;;  %s166_s14 = sadd.s32 1, %s1011_s29 }
   0xd   : > { %p42_p0 = scmp.ge.s32.totalorder %s40_s13, 2  ;;  %p176_p1 = scmp.ne.s32.totalorder %s1011_s29, %s1007_s28 }
   0xe   : > { %p177_p2 = scmp.eq.s32.totalorder %s1347_s11, 1  ;;  %p182_p3 = scmp.ne.s32.totalorder %s1007_s28, %s1003_s27 }
   0xf   : > { %s1365_s13 = smov (%p42_p0, %s40_s13), 0  ;;  %p183_p5 = scmp.eq.s32.totalorder %s1345_s12, 1 }
  0x10   : > { %p1118_p4 = por %p177_p2, %p176_p1  ;;  %s163_s16 = ssub.s32 %s1019_s9, %s1365_s13 }
  0x11   : > { %p760_p6 = scmp.ge.s32.totalorder %s1023_s10, 1  ;;  %p164_p7 = scmp.eq.s32.totalorder %s163_s16, 0 }
  0x12   : > { %p1127_p8 = por %p183_p5, %p182_p3  ;;  %p306_p9 = scmp.lt.s32.totalorder %s1023_s10, 3 }
  0x13   : > { %s1133_s18 = scalar_select %p164_p7, %s1011_s29, %s166_s14  }
  0x14   : > { %p307_p10 = pnand %p760_p6, %p306_p9 }
  0x15   : > { %p357_p11 = scmp.lt.s32.totalorder (!%p307_p10), %s1015_s30, 1  ;;  %v1025_v0 = vmov (!%p307_p10), 0   ;;  %s1352_s0 = sld [smem:[#allocation14_spill]] (!%p307_p10)  ;;  %vm449_vm0 = vcmask (!%p307_p10), 39936   ;;  %v462_v8 = vlaneseq (!%p307_p10)  ;;  %v375_v10 = vld [vmem:[%s1339_s3] sm:$0xf] (!%p307_p10) }
  0x16   : > { %310 = sbr.rel (%p307_p10) target bundleno = 560 (0x230), region = 40  ;;  %843 = vset.pattern.permute.xlu0 (!%p307_p10), %v1025_v0  ;;  %844 = vset.pattern.permute.xlu1 (!%p307_p10), %v1025_v0  ;;  %s1353_s1 = sld [smem:[#allocation15_spill]] (!%p307_p10)  ;;  %v376_v11 = vld [vmem:[%s1340_s4] sm:$0xf] (!%p307_p10)  ;;  %v390_v13 = vmul.f32 (!%p307_p10), 0.5, %v375_v10  ;;  %vm379_vm2 = vcmask (!%p307_p10), 1043456  }
  0x17   : > { %v463_v9 = vand.u32 (!%p307_p10), 127, %v462_v8  ;;  %v396_v14 = vmul.f32 (!%p307_p10), 0.5, %v376_v11  ;;  %v763_v28 = vld [vmem:[%s1338_s2] ss:$0 sm:$0xff] (!%p307_p10)  ;;  %v377_v46 = vsub.f32 (!%p307_p10), %v375_v10, %v376_v11  ;;  %vm438_vm3 = vcmask (!%p307_p10), 1040384   ;;  %s1171_s25 = sand.u32 (!%p307_p10), 1, %s1007_s28  }
  0x18   : > { %v392_v15 = vrot.slane (!%p307_p10), %v390_v13, 2  ;;  %vm372_vm4 = vcmask (!%p307_p10), 0   ;;  %s1346_s26 = scalar_lea.vmem (!%p307_p10), [#allocation8], %s1171_s25  ;;  %s1180_s16 = sshll.u32 (!%p307_p10), %s1015_s30, 4 }
  0x19   : > { %v398_v16 = vrot.slane (!%p307_p10), %v396_v14, 2  ;;  %v378_v49 = vand.u32 (!%p307_p10), 2147483647, %v377_v46  ;;  %s1186_s21 = scalar_lea.hbm (!%p307_p10), %s1344_s8, %s1180_s16  ;;  %s1027_s12 = smov (!%p307_p10), [#allocation9]  }
  0x1a   : > { %v394_v17 = vsub.f32 (!%p307_p10), %v375_v10, %v392_v15  ;;  %v395_v18 = vadd.f32 (!%p307_p10), %v392_v15, %v375_v10 }
  0x1b   : > { %v400_v19 = vsub.f32 (!%p307_p10), %v376_v11, %v398_v16  ;;  %v401_v20 = vadd.f32 (!%p307_p10), %v398_v16, %v376_v11  ;;  %v380_v51 = vsel (!%p307_p10), %vm379_vm2, %v378_v49, 0.0 }
  0x1c   : > { %v402_v29 = vsub.f32 (!%p307_p10), %v395_v18, %v394_v17  ;;  %v381_v52 = vrot.slane (!%p307_p10), %v380_v51, 4 }
  0x1d   : > { %s358_s19 = scalar_select %p357_p11, %s1015_s30, 1  ;;  %v412_v21 = vmin.f32 %v395_v18, %v401_v20  ;;  %v413_v22 = vmax.f32 %v394_v17, %v400_v19  ;;  %v424_v23 = vmax.f32 %v395_v18, %v401_v20  ;;  %v425_v24 = vmin.f32 %v394_v17, %v400_v19 }
  0x1e   : > { %v407_v30 = vsub.f32 %v401_v20, %v400_v19  ;;  %v404_v34 = vrot.slane %v402_v29, 1  ;;  %v382_v53 = vadd.f32 %v381_v52, %v380_v51 }
  0x1f   : > { %s761_s20 = sshll.u32 %s358_s19, 2  ;;  %s762_s24 = sshll.u32 %s358_s19, 3  ;;  %v414_v31 = vsub.f32 %v412_v21, %v413_v22  ;;  %v426_v32 = vsub.f32 %v424_v23, %v425_v24 }
  0x20   : > { %s360_s23 = scalar_lea.vmem %s1352_s0, %s761_s20  ;;  %s366_s14 = scalar_lea.vmem %s1353_s1, %s762_s24  ;;  %v409_v35 = vrot.slane %v407_v30, 1  ;;  %v406_v39 = vmul.f32 %v404_v34, %v402_v29  ;;  %v383_v54 = vrot.slane %v382_v53, 2 }
  0x21   : > { %v445_v1 = vld [vmem:[%s360_s23] sm:$0xf]  ;;  %v415_v36 = vmax.f32 %v414_v31, 0.0  ;;  %v427_v38 = vmax.f32 %v426_v32, 0.0  ;;  %s764_s24 = sshll.u32 %s1015_s30, 3  ;;  %s549_s23 = scalar_lea.sflag [#allocation10], %s1171_s25 }
  0x22   : > { %v446_v2 = vunpack.c.l.bf16 %v445_v1  ;;  %v447_v4 = vld [vmem:[%s366_s14] sm:$0xff]  ;;  %v411_v40 = vmul.f32 %v409_v35, %v407_v30  ;;  %v384_v55 = vadd.f32 %v383_v54, %v382_v53  ;;  %v1026_v1 = vmov 0.0   ;;  %s355_s14 = scalar_lea.vmem [#allocation9], %s1171_s25 }
  0x23   : > { %v417_v41 = vrot.slane %v415_v36, 1  ;;  %v429_v42 = vrot.slane %v427_v38, 1  ;;  %373 = vst.msk [vmem:[#allocation2] sm:$0x1] %vm372_vm4, %v1026_v1  ;;  %374 = vst.msk [vmem:[#allocation3] sm:$0x1] %vm372_vm4, %v1026_v1 }
  0x24   : > { %v450_v3 = vsel %vm449_vm0, %v446_v2, -inf  ;;  %v420_v45 = vadd.f32 %v411_v40, %v406_v39  ;;  %v385_v58 = vrot.slane %v384_v55, 1  ;;  %s600_s22 = sshll.u32 %s355_s14, 4  ;;  %s601_s22 = int_to_ptr.vmem [resolvable:$true] %s600_s22 }
  0x25   : > { %451 = vmax.xlane.f32.xlu0 %v450_v3  ;;  %v419_v44 = vmul.f32 %v417_v41, %v415_v36  ;;  %v431_v47 = vmul.f32 %v429_v42, %v427_v38  ;;  %v1166_v3 = vshrl.u32 %v462_v8, 7 }
  0x26   : > { %v386_v61 = vadd.f32 %v385_v58, %v384_v55 }
  0x27   : > { %v421_v48 = vsub.f32 %v420_v45, %v419_v44  ;;  %v433_v50 = vadd.f32 1e-06, %v431_v47 }
  0x29   : > { %v432_v56 = vsub.f32 %v431_v47, %v421_v48 }
  0x2a   : > { %v502_v21 = vld [vmem:[#allocation3] sm:$0x1]  ;;  %v491_v31 = vld [vmem:[#allocation2] sm:$0x1] }
  0x3b   : > { %465 = vperm.xlu0 %843, %v447_v4   ;;  %v486_v4 = vstv %s764_s24  ;;  %s853_s24 = scalar_lea.vmem %s601_s22, 16 }
  0x3c   : > { %p854_p12 = scmp.ne.s32.totalorder %s601_s22, %s853_s24 }
  0x3e   : > { %p855_p13 = pnand %p854_p12, %p1118_p4 }
  0x40   : > { %p856_p0 = pneg %p855_p13 }
  0xb2   : > { %v1144_v5 = vpop.xlane.xlu0 %451 }
  0xb3   : > { %v453_v6 = vsub.f32 %v446_v2, %v1144_v5 }
  0xb5   : > { %v454_v7 = vmul.f32 1.442695, %v453_v6 }
  0xb7   : > { %845 = vpow2.f32 %v454_v7  ;;  %v487_v7 = vadd.s32 %v486_v4, %v1166_v3 }
  0xb8   : > { %847 = vrcp.f32 %v421_v48 }
  0xb9   : > { %849 = vrcp.f32 %v433_v50  ;;  %vm488_vm5 = vcmp.lt.s32.totalorder %v487_v7, 16 }
  0xba   : > { %v466_v12 = vpop.permute.xlu0 %465 }
  0xbb   : > { %vm467_vm1 = vcmp.eq.s32.totalorder %v463_v9, %v466_v12 }
  0xbc   : > { %v468_v26 = vsel %vm467_vm1, %v446_v2, -inf  ;;  %v478_v37 = vsel %vm467_vm1, %v763_v28, 0.0 }
  0xbd   : > { %v469_v33 = vsel %vm449_vm0, %v468_v26, -inf  ;;  %v479_v43 = vsel %vm449_vm0, %v478_v37, -inf }
  0xc1   : > { %v846_v25 = vpop.eup %845 }
  0xc2   : > { %v456_v27 = vsel %vm449_vm0, %v846_v25, 0.0  ;;  %v848_v57 = vpop.eup %847 }
  0xc3   : > { %457 = vadd.xlane.f32.xlu1 %v456_v27  ;;  %v850_v59 = vpop.eup %849  ;;  %v423_v60 = vmul.f32 %v848_v57, %v419_v44 }
  0xc4   : > { %v435_v62 = vmul.f32 %v850_v59, %v432_v56 }
  0xc6   : > { %v436_v63 = vsub.f32 %v423_v60, %v435_v62 }
  0xc7   : > { %470 = vmax.xlane.f32.xlu1 %v469_v33 }
  0xc8   : > { %v437_v0 = vsub.f32 1.0, %v436_v63 }
  0xca   : > { %v439_v2 = vsel %vm438_vm3, %v437_v0, 0.0 }
  0xcb   : > { %480 = vmax.xlane.f32.xlu1 %v479_v43 }
  0xcf   : > { %387 = vadd.xlane.f32.xlu1 %v386_v61 }
  0xd3   : > { %440 = vadd.xlane.f32.xlu1 %v439_v2 }
 0x150   : > { %v458_v6 = vpop.xlane.xlu1 %457 }
 0x151   : > { %851 = vlog2.f32 %v458_v6 }
 0x154   : > { %v471_v9 = vpop.xlane.xlu1 %470 }
 0x158   : > { %v481_v10 = vpop.xlane.xlu1 %480 }
 0x159   : > { %v489_v11 = vsel %vm488_vm5, %v481_v10, 0.0 }
 0x15a   : > { %v503_v12 = vrot.slane %v489_v11, 4 }
 0x15b   : > { %v852_v13 = vpop.eup %851 }
 0x15c   : > { %v460_v14 = vmul.f32 0.6931472, %v852_v13  ;;  %v504_v15 = vadd.f32 %v503_v12, %v489_v11  ;;  %v388_v26 = vpop.xlane.xlu1 %387 }
 0x15e   : > { %v461_v16 = vadd.f32 %v460_v14, %v1144_v5  ;;  %v505_v17 = vrot.slane %v504_v15, 2  ;;  %v389_v5 = vmul.f32 0.16666667, %v388_v26 }
 0x160   : > { %v490_v18 = vsub.f32 %v461_v16, %v471_v9  ;;  %v506_v8 = vadd.f32 %v505_v17, %v504_v15  ;;  %443 = vst [vmem:[%s1346_s26] sm:$0x1] %v389_v5  ;;  %v441_v30 = vpop.xlane.xlu1 %440  ;;  %s857_s26 = sshll.u32 %s1027_s12, 4  ;;  %s858_s26 = int_to_ptr.vmem [resolvable:$false] %s857_s26 }
 0x161   : > { %v442_v32 = vmul.f32 0.16666667, %v441_v30  ;;  %s859_s11 = scalar_lea.vmem %s858_s26, 32  ;;  %p860_p1 = scmp.lt.s32.totalorder %s601_s22, %s858_s26 }
 0x162   : > { %v492_v19 = vmul.f32 %v490_v18, %v489_v11  ;;  %v507_v20 = vrot.slane %v506_v8, 1  ;;  %p861_p2 = scmp.lt.s32.totalorder %s859_s11, %s853_s24 }
 0x163   : > { %444 = vst [vmem:[%s355_s14] sm:$0x1] %v442_v32 }
 0x164   : > { %v493_v22 = vrot.slane %v492_v19, 4  ;;  %v508_v23 = vadd.f32 %v507_v20, %v506_v8  ;;  %p862_p3 = por %p861_p2, %p860_p1 }
 0x166   : > { %v494_v24 = vadd.f32 %v493_v22, %v492_v19  ;;  %v509_v25 = vadd.f32 %v508_v23, %v502_v21  ;;  %p863_p5 = pnand %p862_p3, %p856_p0 }
 0x168   : > { %v495_v27 = vrot.slane %v494_v24, 2  ;;  %510 = vst.msk [vmem:[#allocation3] sm:$0x1] %vm372_vm4, %v509_v25 }
 0x16a   : > { %v496_v28 = vadd.f32 %v495_v27, %v494_v24 }
 0x16c   : > { %v497_v29 = vrot.slane %v496_v28, 1 }
 0x16e   : > { %v498_v33 = vadd.f32 %v497_v29, %v496_v28 }
 0x16f   : > { %v525_v34 = vld [vmem:[#allocation3] sm:$0x1] }
 0x170   : > { %v499_v35 = vadd.f32 %v498_v33, %v491_v31  ;;  %528 = vperm.xlu1 %844, %v525_v34  }
 0x172   : > { %501 = vst.msk [vmem:[#allocation2] sm:$0x1] %vm372_vm4, %v499_v35 }
 0x179   : > { %v514_v36 = vld [vmem:[#allocation2] sm:$0x1] }
 0x17a   : > { %517 = vperm.xlu1 %844, %v514_v36  }
 0x17b   : > { %866 = shalt.err (!%p863_p5)
}
 0x17c   : > { %s867_s30 = scalar_lea.hbm %s1186_s21, 16  ;;  %s871_s12 = scalar_lea.hbm %s1344_s8, 32 }
 0x17d   : > { %p868_p6 = scmp.ne.s32.totalorder %s1186_s21, %s867_s30  ;;  %p872_p10 = scmp.lt.u32.totalorder %s1186_s21, %s1344_s8 }
 0x17e   : > { %p873_p11 = scmp.lt.u32.totalorder %s871_s12, %s867_s30  ;;  %p875_p13 = scmp.lt.u32.totalorder %s867_s30, %s1186_s21 }
 0x17f   : > { %p869_p7 = pnand %p868_p6, %p1118_p4 }
 0x180   : > { %p874_p12 = por %p873_p11, %p872_p10 }
 0x181   : > { %p870_p9 = pneg %p869_p7 }
 0x182   : > { %p876_p0 = por %p875_p13, %p874_p12 }
 0x184   : > { %p877_p1 = pnand %p876_p0, %p870_p9 }
 0x186   : > { %880 = shalt.err (!%p877_p1)
}
 0x187   : > { %774 = dma.vmem_to_hbm [thread:$0]  (%p1118_p4), %s601_s22, 16, %s1186_s21, %s549_s23   ;;  %v522_v37 = vsub.s32 0, %v1166_v3 }
 0x188   : > { %s1354_s11 = sadd.s32 4294967295, %s1023_s10   ;;  %s343_s30 = scalar_lea.vmem [#allocation6], %s1171_s25 }
 0x189   : > { %s1209_s24 = sand.u32 1, %s1354_s11   ;;  %s574_s14 = sshll.u32 %s343_s30, 4  ;;  %s1222_s14 = int_to_ptr.vmem [resolvable:$true] %s574_s14 }
 0x18a   : > { %s1355_s20 = scalar_lea.vmem [#allocation8], %s1171_s25  ;;  %s1220_s0 = scalar_lea.hbm %s1342_s6, %s1180_s16 }
 0x18b   : > { %s587_s12 = sshll.u32 %s1355_s20, 4  ;;  %s1230_s23 = scalar_lea.hbm %s1343_s7, %s1180_s16  ;;  %s1224_s12 = int_to_ptr.vmem [resolvable:$true] %s587_s12 }
 0x18c   : > { %s881_s20 = scalar_lea.vmem %s1222_s14, 16  ;;  %s1028_s19 = smov [#allocation6]  }
 0x18d   : > { %p882_p2 = scmp.ne.s32.totalorder %s1222_s14, %s881_s20  ;;  %s885_s26 = sshll.u32 %s1028_s19, 4  ;;  %s886_s26 = int_to_ptr.vmem [resolvable:$false] %s885_s26 }
 0x18e   : > { %s887_s1 = scalar_lea.vmem %s886_s26, 32  ;;  %p888_p6 = scmp.lt.s32.totalorder %s1222_s14, %s886_s26 }
 0x18f   : > { %p883_p3 = pnand %p882_p2, %p1118_p4  ;;  %p889_p7 = scmp.lt.s32.totalorder %s887_s1, %s881_s20 }
 0x191   : > { %p884_p5 = pneg %p883_p3  ;;  %p890_p9 = por %p889_p7, %p888_p6 }
 0x193   : > { %p891_p10 = pnand %p890_p9, %p884_p5 }
 0x1ef   : > { %v529_v38 = vpop.permute.xlu1 %528 }
 0x1f0   : > { %v534_v39 = vrot.slane %v529_v38, %v522_v37 }
 0x1f2   : > { %535 = vst [vmem:[%s343_s30] sm:$0x1] %v534_v39 }
 0x1f3   : > { %894 = shalt.err (!%p891_p10)
}
 0x1f4   : > { %s895_s30 = scalar_lea.hbm %s1220_s0, 16  ;;  %s899_s19 = scalar_lea.hbm %s1342_s6, 32 }
 0x1f5   : > { %p896_p11 = scmp.ne.s32.totalorder %s1220_s0, %s895_s30  ;;  %p900_p0 = scmp.lt.u32.totalorder %s1220_s0, %s1342_s6 }
 0x1f6   : > { %p901_p1 = scmp.lt.u32.totalorder %s899_s19, %s895_s30  ;;  %p903_p3 = scmp.lt.u32.totalorder %s895_s30, %s1220_s0 }
 0x1f7   : > { %p897_p12 = pnand %p896_p11, %p1118_p4 }
 0x1f8   : > { %p902_p2 = por %p901_p1, %p900_p0 }
 0x1f9   : > { %p898_p13 = pneg %p897_p12 }
 0x1fa   : > { %p904_p5 = por %p903_p3, %p902_p2 }
 0x1fc   : > { %p905_p6 = pnand %p904_p5, %p898_p13 }
 0x1fe   : > { %908 = shalt.err (!%p905_p6)
}
 0x1ff   : > { %s1356_s1 = scalar_lea.sflag [#allocation7], %s1209_s24  ;;  %s909_s20 = scalar_lea.vmem %s1224_s12, 16 }
 0x200   : > { %772 = dma.vmem_to_hbm [thread:$0]  (%p1118_p4), %s1222_s14, 16, %s1220_s0, %s1356_s1  }
 0x201   : > { %p910_p7 = scmp.ne.s32.totalorder %s1224_s12, %s909_s20  ;;  %s1029_s11 = smov [#allocation8]  }
 0x202   : > { %s913_s30 = sshll.u32 %s1029_s11, 4  ;;  %s914_s30 = int_to_ptr.vmem [resolvable:$false] %s913_s30 }
 0x203   : > { %p911_p9 = pnand %p910_p7, %p1118_p4  ;;  %s915_s21 = scalar_lea.vmem %s914_s30, 32 }
 0x204   : > { %p916_p11 = scmp.lt.s32.totalorder %s1224_s12, %s914_s30  ;;  %p917_p12 = scmp.lt.s32.totalorder %s915_s21, %s909_s20 }
 0x205   : > { %p912_p10 = pneg %p911_p9 }
 0x206   : > { %p918_p13 = por %p917_p12, %p916_p11 }
 0x208   : > { %p919_p0 = pnand %p918_p13, %p912_p10 }
 0x20a   : > { %922 = shalt.err (!%p919_p0)
}
 0x20b   : > { %s923_s0 = scalar_lea.hbm %s1230_s23, 16  ;;  %s927_s19 = scalar_lea.hbm %s1343_s7, 32 }
 0x20c   : > { %p924_p1 = scmp.ne.s32.totalorder %s1230_s23, %s923_s0  ;;  %p928_p5 = scmp.lt.u32.totalorder %s1230_s23, %s1343_s7 }
 0x20d   : > { %p929_p6 = scmp.lt.u32.totalorder %s927_s19, %s923_s0  ;;  %p931_p9 = scmp.lt.u32.totalorder %s923_s0, %s1230_s23 }
 0x20e   : > { %p925_p2 = pnand %p924_p1, %p1118_p4 }
 0x20f   : > { %p930_p7 = por %p929_p6, %p928_p5 }
 0x210   : > { %p926_p3 = pneg %p925_p2 }
 0x211   : > { %p932_p10 = por %p931_p9, %p930_p7 }
 0x213   : > { %p933_p11 = pnand %p932_p10, %p926_p3 }
 0x215   : > { %936 = shalt.err (!%p933_p11)
}
 0x216   : > { %s1357_s20 = scalar_lea.sflag [#allocation7], %s1209_s24  ;;  %s337_s11 = scalar_lea.vmem [#allocation4], %s1171_s25  ;;  %v518_v40 = vpop.permute.xlu1 %517 }
 0x217   : > { %773 = dma.vmem_to_hbm [thread:$0]  (%p1118_p4), %s1224_s12, 16, %s1230_s23, %s1357_s20   ;;  %v523_v41 = vrot.slane %v518_v40, %v522_v37 }
 0x218   : > { %s561_s30 = sshll.u32 %s337_s11, 4  ;;  %s1286_s14 = scalar_lea.hbm %s1341_s5, %s1180_s16  ;;  %s1288_s30 = int_to_ptr.vmem [resolvable:$true] %s561_s30 }
 0x219   : > { %524 = vst [vmem:[%s337_s11] sm:$0x1] %v523_v41  ;;  %s537_s24 = scalar_lea.sflag [#allocation5], %s1171_s25  ;;  %s937_s22 = scalar_lea.vmem %s1288_s30, 16 }
 0x21a   : > { %p938_p12 = scmp.ne.s32.totalorder %s1288_s30, %s937_s22  ;;  %s1030_s12 = smov [#allocation4]  }
 0x21b   : > { %s941_s23 = sshll.u32 %s1030_s12, 4  ;;  %s942_s23 = int_to_ptr.vmem [resolvable:$false] %s941_s23 }
 0x21c   : > { %p939_p13 = pnand %p938_p12, %p1118_p4  ;;  %s943_s19 = scalar_lea.vmem %s942_s23, 32 }
 0x21d   : > { %p944_p1 = scmp.lt.s32.totalorder %s1288_s30, %s942_s23  ;;  %p945_p2 = scmp.lt.s32.totalorder %s943_s19, %s937_s22 }
 0x21e   : > { %p940_p0 = pneg %p939_p13 }
 0x21f   : > { %p946_p3 = por %p945_p2, %p944_p1 }
 0x221   : > { %p947_p5 = pnand %p946_p3, %p940_p0 }
 0x223   : > { %950 = shalt.err (!%p947_p5)
}
 0x224   : > { %s951_s25 = scalar_lea.hbm %s1286_s14, 16  ;;  %s955_s1 = scalar_lea.hbm %s1341_s5, 32 }
 0x225   : > { %p952_p6 = scmp.ne.s32.totalorder %s1286_s14, %s951_s25  ;;  %p956_p10 = scmp.lt.u32.totalorder %s1286_s14, %s1341_s5 }
 0x226   : > { %p957_p11 = scmp.lt.u32.totalorder %s955_s1, %s951_s25  ;;  %p959_p13 = scmp.lt.u32.totalorder %s951_s25, %s1286_s14 }
 0x227   : > { %p953_p7 = pnand %p952_p6, %p1118_p4 }
 0x228   : > { %p958_p12 = por %p957_p11, %p956_p10 }
 0x229   : > { %p954_p9 = pneg %p953_p7 }
 0x22a   : > { %p960_p0 = por %p959_p13, %p958_p12 }
 0x22c   : > { %p961_p1 = pnand %p960_p0, %p954_p9 }
 0x22e   : > { %964 = shalt.err (!%p961_p1)
}
 0x22f   : > { %771 = dma.vmem_to_hbm [thread:$0]  (%p1118_p4), %s1288_s30, 16, %s1286_s14, %s537_s24  }
 0x230 PF: > { %p792_p2 = scmp.ge.s32.totalorder %s1023_s10, 2  ;;  %s612_s21 = sand.u32 1, %s1003_s27  }
 0x231   : > { %s613_s0 = scalar_lea.sflag [#allocation5], %s612_s21 }
 0x232   : > { %p780_p3 = pnand %p792_p2, %p1127_p8 }
 0x234   : > { %990 = dma.done.wait (!%p780_p3), %s613_s0, 16  }
 0x235   : > { %992 = vsyncadd (!%p780_p3), %s613_s0, 4294967280  ;;  %s1358_s22 = sadd.s32 4294967294, %s1023_s10  }
 0x236   : > { %s620_s12 = sand.u32 1, %s1358_s22  }
 0x237   : > { %s621_s23 = scalar_lea.sflag [#allocation7], %s620_s12 }
 0x238   : > { %994 = dma.done.wait (!%p780_p3), %s621_s23, 32  }
 0x239   : > { %996 = vsyncadd (!%p780_p3), %s621_s23, 4294967264  ;;  %s637_s15 = scalar_lea.sflag [#allocation10], %s612_s21 }
 0x23a   : > { %998 = dma.done.wait (!%p780_p3), %s637_s15, 16  }
 0x23b   : > { %1000 = vsyncadd (!%p780_p3), %s637_s15, 4294967280  ;;  %s28_s10 = sadd.s32 1, %s1023_s10   ;;  %s1359_s27 = smov %s1007_s28 }
 0x23c   : > { %p25_p4 = scmp.ge.s32.totalorder %s28_s10, 4   ;;  %s1360_s28 = smov %s1011_s29 }
 0x23d   : > { %s1361_s29 = smov %s1133_s18  ;;  %s1362_s30 = smov %s1019_s9 }
 0x23e   : > { %s1363_s9 = smov %s1365_s13  ;;  %27 = sbr.rel (!%p25_p4) target bundleno = 11 (0xb), region = 135 }
 0x245   :  { %641 = vsyncpa [#allocation5], 1 }
 0x246   :  { %643 = vsyncpa [#allocation5 + $0x1], 1 }
 0x247   :  { %644 = vsyncpa [#allocation7], 1 }
 0x248   :  { %646 = vsyncpa [#allocation7 + $0x1], 1 }
 0x249   :  { %647 = vsyncpa [#allocation10], 1 }
 0x24a   :  { %649 = vsyncpa [#allocation10 + $0x1], 1 }

</bundles_post_ra>
